<compile_context>
chip_gen: v6e
topology: v6e:2x2x1
jax: 0.10.0
libtpu: 0.0.40
codegen_flags: <defaults>
</compile_context>

<pallas_src>
import jax
import jax.numpy as jnp
from jax import lax
from jax.experimental import pallas as pl
from jax.experimental.pallas import tpu as pltpu


def _qkv_proj_kernel(x_ref, wq_ref, bq_ref, wk_ref, bk_ref, wv_ref, bv_ref,
                     q_ref, k_ref, v_ref):
    """1x1-conv projections for one batch element, channel-major.

    x_ref: (C, N) f32; w*_ref: (Cout, C) f32; b*_ref: (Cout, 1) f32.
    Outputs are bf16, lane-dense (last dim = N).
    """
    x = x_ref[...]
    q = jnp.dot(wq_ref[...], x, preferred_element_type=jnp.float32) + bq_ref[...]
    k = jnp.dot(wk_ref[...], x, preferred_element_type=jnp.float32) + bk_ref[...]
    v = jnp.dot(wv_ref[...], x, preferred_element_type=jnp.float32) + bv_ref[...]
    q_ref[...] = q.astype(q_ref.dtype)
    k_ref[...] = k.astype(k_ref.dtype)
    v_ref[...] = v.astype(v_ref.dtype)


def _attention_kernel(x_ref, q_ref, k_ref, v_ref, gamma_ref, o_ref):
    """Attention + gamma-residual for one (batch, query-tile) grid step.

    x_ref: (C, TQ) f32 residual tile
    q_ref: (Ck, TQ) bf16 query tile
    k_ref: (Ck, N)  bf16 all keys for this batch element
    v_ref: (C, N)   bf16 all values for this batch element
    o_ref: (C, TQ)  f32
    """
    # energy[j, i] = <q_i, k_j>: contract the (tiny) channel axis of both
    # operands directly — no explicit transpose. Keys land on sublanes,
    # queries on lanes.
    energy = lax.dot_general(
        k_ref[...], q_ref[...], (((0,), (0,)), ((), ())),
        preferred_element_type=jnp.float32)                       # (N, TQ) f32

    # Softmax over keys (axis 0), normalization deferred to the output.
    m = jnp.max(energy, axis=0, keepdims=True)                    # (1, TQ)
    p = jnp.exp(energy - m)                                       # (N, TQ) f32
    inv_l = pl.reciprocal(jnp.sum(p, axis=0, keepdims=True),
                          approx=True)                            # (1, TQ)

    # result[:, i] = sum_j p[j, i] * v[:, j]  (unnormalized), then scale the
    # columns by 1/l — N*C multiplies instead of N*N divides.
    result = jnp.dot(v_ref[...], p.astype(v_ref.dtype),
                     preferred_element_type=jnp.float32)          # (C, TQ) f32

    gamma = gamma_ref[0, 0]
    o_ref[...] = (gamma * (result * inv_l) + x_ref[...]).astype(o_ref.dtype)


def _pick_query_tile(n):
    for tq in (512, 256, 128):
        if n % tq == 0:
            return tq
    return n


def self_attention_pallas(x_nchw, wq, bq, wk, bk, wv, bv, gamma):
    """x_nchw: (B, C, H, W) f32. Torch Conv2d-style weights: wq/wk (C//8, C, 1, 1),
       wv (C, C, 1, 1); biases (C//8,), (C,); gamma scalar. Returns (B, C, H, W)."""
    B, C, H, W = x_nchw.shape
    N = H * W
    Ck = wq.shape[0]

    # Channel-major: NCHW -> (B, C, N) is a pure reshape (no HBM transpose).
    x_bcn = x_nchw.reshape(B, C, N).astype(jnp.float32)
    wq2, wk2, wv2 = wq[:, :, 0, 0], wk[:, :, 0, 0], wv[:, :, 0, 0]   # (Cout, C)
    bq2, bk2, bv2 = bq.reshape(Ck, 1), bk.reshape(Ck, 1), bv.reshape(C, 1)
    gamma2 = jnp.asarray(gamma, jnp.float32).reshape(1, 1)

    # ---- Kernel 1: Q/K/V projections, once per batch element (no recompute
    #      per query tile), bf16 outputs. ----
    q_bcn, k_bcn, v_bcn = pl.pallas_call(
        _qkv_proj_kernel,
        out_shape=(
            jax.ShapeDtypeStruct((B, Ck, N), jnp.bfloat16),
            jax.ShapeDtypeStruct((B, Ck, N), jnp.bfloat16),
            jax.ShapeDtypeStruct((B, C, N), jnp.bfloat16),
        ),
        grid_spec=pltpu.PrefetchScalarGridSpec(
            num_scalar_prefetch=0,
            grid=(B,),
            in_specs=[
                pl.BlockSpec((pl.Squeezed(), C, N), lambda b: (b, 0, 0)),   # x
                pl.BlockSpec((Ck, C), lambda b: (0, 0)),                    # Wq
                pl.BlockSpec((Ck, 1), lambda b: (0, 0)),                    # bq
                pl.BlockSpec((Ck, C), lambda b: (0, 0)),                    # Wk
                pl.BlockSpec((Ck, 1), lambda b: (0, 0)),                    # bk
                pl.BlockSpec((C, C), lambda b: (0, 0)),                     # Wv
                pl.BlockSpec((C, 1), lambda b: (0, 0)),                     # bv
            ],
            out_specs=(
                pl.BlockSpec((pl.Squeezed(), Ck, N), lambda b: (b, 0, 0)),  # q
                pl.BlockSpec((pl.Squeezed(), Ck, N), lambda b: (b, 0, 0)),  # k
                pl.BlockSpec((pl.Squeezed(), C, N), lambda b: (b, 0, 0)),   # v
            ),
        ),
        compiler_params=pltpu.CompilerParams(
            dimension_semantics=("parallel",)),
    )(x_bcn, wq2, bq2, wk2, bk2, wv2, bv2)

    # ---- Kernel 2: attention + gamma-residual, tiled over query positions. ----
    TQ = _pick_query_tile(N)
    n_q_tiles = N // TQ

    f32b, bf16b = 4, 2
    vmem_bytes = (
        2 * (C * TQ * f32b + Ck * TQ * bf16b + Ck * N * bf16b
             + C * N * bf16b + C * TQ * f32b)     # double-buffered in/out blocks
        + 2 * N * TQ * f32b                       # energy + exp'd probabilities
        + C * TQ * f32b                           # f32 result accumulator
        + (2 << 20))                              # headroom
    vmem_bytes = min(max(vmem_bytes, 16 << 20), 64 << 20)

    cost = pl.CostEstimate(
        flops=2 * B * N * N * (Ck + C),
        transcendentals=B * N * N,
        bytes_accessed=B * N * (2 * C * f32b + (2 * Ck + C) * bf16b),
    )

    out_bcn = pl.pallas_call(
        _attention_kernel,
        out_shape=jax.ShapeDtypeStruct((B, C, N), jnp.float32),
        grid_spec=pltpu.PrefetchScalarGridSpec(
            num_scalar_prefetch=0,
            grid=(B, n_q_tiles),
            in_specs=[
                pl.BlockSpec((pl.Squeezed(), C, TQ), lambda b, qi: (b, 0, qi)),   # x tile
                pl.BlockSpec((pl.Squeezed(), Ck, TQ), lambda b, qi: (b, 0, qi)),  # q tile
                pl.BlockSpec((pl.Squeezed(), Ck, N), lambda b, qi: (b, 0, 0)),    # k (full)
                pl.BlockSpec((pl.Squeezed(), C, N), lambda b, qi: (b, 0, 0)),     # v (full)
                pl.BlockSpec((1, 1), lambda b, qi: (0, 0)),                       # gamma
            ],
            out_specs=pl.BlockSpec((pl.Squeezed(), C, TQ), lambda b, qi: (b, 0, qi)),
        ),
        compiler_params=pltpu.CompilerParams(
            dimension_semantics=("parallel", "parallel"),
            vmem_limit_bytes=int(vmem_bytes)),
        cost_estimate=cost,
    )(x_bcn, q_bcn, k_bcn, v_bcn, gamma2)

    # (B, C, N) -> NCHW is again a pure reshape.
    return out_bcn.reshape(B, C, H, W)


def _reference_jax(x_nchw, wq, bq, wk, bk, wv, bv, gamma):
    """Plain-JAX reference mirroring the PyTorch forward exactly (NCHW)."""
    B, C, H, W = x_nchw.shape
    N = H * W
    x = x_nchw.reshape(B, C, N)                                        # (B, C, N)
    q = jnp.einsum('oc,bcn->bon', wq[:, :, 0, 0], x) + bq[None, :, None]
    k = jnp.einsum('oc,bcn->bon', wk[:, :, 0, 0], x) + bk[None, :, None]
    v = jnp.einsum('oc,bcn->bon', wv[:, :, 0, 0], x) + bv[None, :, None]
    energy = jnp.einsum('bci,bcj->bij', q, k)                          # (B, N, N)
    attn = jax.nn.softmax(energy, axis=-1)
    result = jnp.einsum('bcj,bij->bci', v, attn)                       # (B, C, N)
    out = gamma * result + x
    return out.reshape(B, C, H, W)


if __name__ == "__main__":
    B, C, H, W = 2, 32, 16, 16   # channels divisible by 8 (C//8 = 4)
    Ck = C // 8

    key = jax.random.PRNGKey(0)
    kx, k1, k2, k3, k4, k5, k6 = jax.random.split(key, 7)

    x = jax.random.normal(kx, (B, C, H, W), dtype=jnp.float32)

    # Deterministic parameter init (Conv2d-shaped weights; kernel_size=1).
    wq = 0.1 * jax.random.normal(k1, (Ck, C, 1, 1), dtype=jnp.float32)
    bq = 0.1 * jax.random.normal(k2, (Ck,), dtype=jnp.float32)
    wk = 0.1 * jax.random.normal(k3, (Ck, C, 1, 1), dtype=jnp.float32)
    bk = 0.1 * jax.random.normal(k4, (Ck,), dtype=jnp.float32)
    wv = 0.1 * jax.random.normal(k5, (C, C, 1, 1), dtype=jnp.float32)
    bv = 0.1 * jax.random.normal(k6, (C,), dtype=jnp.float32)
    # nn.Parameter(torch.zeros(1)) -> gamma starts at 0; use a nonzero value so
    # the attention path is actually exercised by the check.
    gamma = jnp.float32(0.5)

    out = self_attention_pallas(x, wq, bq, wk, bk, wv, bv, gamma)
    out = jax.block_until_ready(out)

    ref = _reference_jax(x, wq, bq, wk, bk, wv, bv, gamma)
    assert out.shape == (B, C, H, W)
    # bf16 MXU operands + approx reciprocal -> loosen tolerance vs the f32 reference.
    assert jnp.allclose(out, ref, atol=2e-2, rtol=2e-2), "mismatch vs reference"

    print("KERNEL_OK")
</pallas_src>

<mosaic_0001>
module attributes {stable_mosaic.version = 11 : i64} {
  func.func @_qkv_proj_kernel(%arg0: i32, %arg1: memref<1x32x256xf32, #tpu.memory_space<vmem>>, %arg2: memref<4x32xf32, #tpu.memory_space<vmem>>, %arg3: memref<4x1xf32, #tpu.memory_space<vmem>>, %arg4: memref<4x32xf32, #tpu.memory_space<vmem>>, %arg5: memref<4x1xf32, #tpu.memory_space<vmem>>, %arg6: memref<32x32xf32, #tpu.memory_space<vmem>>, %arg7: memref<32x1xf32, #tpu.memory_space<vmem>>, %arg8: memref<1x4x256xbf16, #tpu.memory_space<vmem>>, %arg9: memref<1x4x256xbf16, #tpu.memory_space<vmem>>, %arg10: memref<1x32x256xbf16, #tpu.memory_space<vmem>>) attributes {dimension_semantics = [#tpu.dimension_semantics<parallel>], iteration_bounds = array<i64: 2>, scalar_prefetch = 0 : i64, scratch_operands = 0 : i64, tpu.core_type = #tpu.core_type<tc>, window_params = [{transform_indices = @transform_0, window_bounds = array<i64: 1, 32, 256>}, {pipeline_mode = #tpu.pipeline_mode<synchronous>, transform_indices = @transform_1, window_bounds = array<i64: 4, 32>}, {pipeline_mode = #tpu.pipeline_mode<synchronous>, transform_indices = @transform_2, window_bounds = array<i64: 4, 1>}, {pipeline_mode = #tpu.pipeline_mode<synchronous>, transform_indices = @transform_3, window_bounds = array<i64: 4, 32>}, {pipeline_mode = #tpu.pipeline_mode<synchronous>, transform_indices = @transform_4, window_bounds = array<i64: 4, 1>}, {pipeline_mode = #tpu.pipeline_mode<synchronous>, transform_indices = @transform_5, window_bounds = array<i64: 32, 32>}, {pipeline_mode = #tpu.pipeline_mode<synchronous>, transform_indices = @transform_6, window_bounds = array<i64: 32, 1>}, {transform_indices = @transform_7, window_bounds = array<i64: 1, 4, 256>}, {transform_indices = @transform_8, window_bounds = array<i64: 1, 4, 256>}, {transform_indices = @transform_9, window_bounds = array<i64: 1, 32, 256>}]} {
    %c0 = arith.constant 0 : index
    %c0_0 = arith.constant 0 : index
    %c0_1 = arith.constant 0 : index
    %0 = vector.load %arg1[%c0, %c0_0, %c0_1] : memref<1x32x256xf32, #tpu.memory_space<vmem>>, vector<1x32x256xf32>
    %1 = vector.shape_cast %0 : vector<1x32x256xf32> to vector<32x256xf32>
    %c0_2 = arith.constant 0 : index
    %c0_3 = arith.constant 0 : index
    %2 = vector.load %arg2[%c0_2, %c0_3] : memref<4x32xf32, #tpu.memory_space<vmem>>, vector<4x32xf32>
    %cst = arith.constant dense<0.000000e+00> : vector<4x256xf32>
    %3 = tpu.matmul %2, %1, %cst {dimension_numbers = #tpu.dot_dimension_numbers<[1], [0], [0], [1], [0, 0, 1, 1], [], []>} : vector<4x32xf32>, vector<32x256xf32>, vector<4x256xf32> -> vector<4x256xf32>
    %c0_4 = arith.constant 0 : index
    %c0_5 = arith.constant 0 : index
    %4 = vector.load %arg3[%c0_4, %c0_5] : memref<4x1xf32, #tpu.memory_space<vmem>>, vector<4x1xf32>
    %5 = vector.broadcast %4 : vector<4x1xf32> to vector<4x256xf32>
    %6 = arith.addf %3, %5 : vector<4x256xf32>
    %c0_6 = arith.constant 0 : index
    %c0_7 = arith.constant 0 : index
    %7 = vector.load %arg4[%c0_6, %c0_7] : memref<4x32xf32, #tpu.memory_space<vmem>>, vector<4x32xf32>
    %cst_8 = arith.constant dense<0.000000e+00> : vector<4x256xf32>
    %8 = tpu.matmul %7, %1, %cst_8 {dimension_numbers = #tpu.dot_dimension_numbers<[1], [0], [0], [1], [0, 0, 1, 1], [], []>} : vector<4x32xf32>, vector<32x256xf32>, vector<4x256xf32> -> vector<4x256xf32>
    %c0_9 = arith.constant 0 : index
    %c0_10 = arith.constant 0 : index
    %9 = vector.load %arg5[%c0_9, %c0_10] : memref<4x1xf32, #tpu.memory_space<vmem>>, vector<4x1xf32>
    %10 = vector.broadcast %9 : vector<4x1xf32> to vector<4x256xf32>
    %11 = arith.addf %8, %10 : vector<4x256xf32>
    %c0_11 = arith.constant 0 : index
    %c0_12 = arith.constant 0 : index
    %12 = vector.load %arg6[%c0_11, %c0_12] : memref<32x32xf32, #tpu.memory_space<vmem>>, vector<32x32xf32>
    %cst_13 = arith.constant dense<0.000000e+00> : vector<32x256xf32>
    %13 = tpu.matmul %12, %1, %cst_13 {dimension_numbers = #tpu.dot_dimension_numbers<[1], [0], [0], [1], [0, 0, 1, 1], [], []>} : vector<32x32xf32>, vector<32x256xf32>, vector<32x256xf32> -> vector<32x256xf32>
    %c0_14 = arith.constant 0 : index
    %c0_15 = arith.constant 0 : index
    %14 = vector.load %arg7[%c0_14, %c0_15] : memref<32x1xf32, #tpu.memory_space<vmem>>, vector<32x1xf32>
    %15 = vector.broadcast %14 : vector<32x1xf32> to vector<32x256xf32>
    %16 = arith.addf %13, %15 : vector<32x256xf32>
    %17 = arith.truncf %6 : vector<4x256xf32> to vector<4x256xbf16>
    %c0_16 = arith.constant 0 : index
    %c0_17 = arith.constant 0 : index
    %c0_18 = arith.constant 0 : index
    %18 = vector.load %arg8[%c0_16, %c0_17, %c0_18] : memref<1x4x256xbf16, #tpu.memory_space<vmem>>, vector<1x4x256xbf16>
    %19 = vector.shape_cast %18 : vector<1x4x256xbf16> to vector<4x256xbf16>
    %20 = vector.shape_cast %17 : vector<4x256xbf16> to vector<1x4x256xbf16>
    tpu.vector_store %arg8[%c0_16, %c0_17, %c0_18], %20 {strides = array<i32>} : memref<1x4x256xbf16, #tpu.memory_space<vmem>>, vector<1x4x256xbf16>,
    %21 = arith.truncf %11 : vector<4x256xf32> to vector<4x256xbf16>
    %c0_19 = arith.constant 0 : index
    %c0_20 = arith.constant 0 : index
    %c0_21 = arith.constant 0 : index
    %22 = vector.load %arg9[%c0_19, %c0_20, %c0_21] : memref<1x4x256xbf16, #tpu.memory_space<vmem>>, vector<1x4x256xbf16>
    %23 = vector.shape_cast %22 : vector<1x4x256xbf16> to vector<4x256xbf16>
    %24 = vector.shape_cast %21 : vector<4x256xbf16> to vector<1x4x256xbf16>
    tpu.vector_store %arg9[%c0_19, %c0_20, %c0_21], %24 {strides = array<i32>} : memref<1x4x256xbf16, #tpu.memory_space<vmem>>, vector<1x4x256xbf16>,
    %25 = arith.truncf %16 : vector<32x256xf32> to vector<32x256xbf16>
    %c0_22 = arith.constant 0 : index
    %c0_23 = arith.constant 0 : index
    %c0_24 = arith.constant 0 : index
    %26 = vector.load %arg10[%c0_22, %c0_23, %c0_24] : memref<1x32x256xbf16, #tpu.memory_space<vmem>>, vector<1x32x256xbf16>
    %27 = vector.shape_cast %26 : vector<1x32x256xbf16> to vector<32x256xbf16>
    %28 = vector.shape_cast %25 : vector<32x256xbf16> to vector<1x32x256xbf16>
    tpu.vector_store %arg10[%c0_22, %c0_23, %c0_24], %28 {strides = array<i32>} : memref<1x32x256xbf16, #tpu.memory_space<vmem>>, vector<1x32x256xbf16>,
    return
  }
  func.func @transform_0(%arg0: i32) -> (i32, i32, i32) {
    %c0_i32 = arith.constant 0 : i32
    %c0_i32_0 = arith.constant 0 : i32
    %c0_i32_1 = arith.constant 0 : i32
    return %arg0, %c0_i32, %c0_i32_0 : i32, i32, i32
  }
  func.func @transform_1(%arg0: i32) -> (i32, i32) {
    %c0_i32 = arith.constant 0 : i32
    %c0_i32_0 = arith.constant 0 : i32
    %c0_i32_1 = arith.constant 0 : i32
    return %c0_i32, %c0_i32_0 : i32, i32
  }
  func.func @transform_2(%arg0: i32) -> (i32, i32) {
    %c0_i32 = arith.constant 0 : i32
    %c0_i32_0 = arith.constant 0 : i32
    %c0_i32_1 = arith.constant 0 : i32
    return %c0_i32, %c0_i32_0 : i32, i32
  }
  func.func @transform_3(%arg0: i32) -> (i32, i32) {
    %c0_i32 = arith.constant 0 : i32
    %c0_i32_0 = arith.constant 0 : i32
    %c0_i32_1 = arith.constant 0 : i32
    return %c0_i32, %c0_i32_0 : i32, i32
  }
  func.func @transform_4(%arg0: i32) -> (i32, i32) {
    %c0_i32 = arith.constant 0 : i32
    %c0_i32_0 = arith.constant 0 : i32
    %c0_i32_1 = arith.constant 0 : i32
    return %c0_i32, %c0_i32_0 : i32, i32
  }
  func.func @transform_5(%arg0: i32) -> (i32, i32) {
    %c0_i32 = arith.constant 0 : i32
    %c0_i32_0 = arith.constant 0 : i32
    %c0_i32_1 = arith.constant 0 : i32
    return %c0_i32, %c0_i32_0 : i32, i32
  }
  func.func @transform_6(%arg0: i32) -> (i32, i32) {
    %c0_i32 = arith.constant 0 : i32
    %c0_i32_0 = arith.constant 0 : i32
    %c0_i32_1 = arith.constant 0 : i32
    return %c0_i32, %c0_i32_0 : i32, i32
  }
  func.func @transform_7(%arg0: i32) -> (i32, i32, i32) {
    %c0_i32 = arith.constant 0 : i32
    %c0_i32_0 = arith.constant 0 : i32
    %c0_i32_1 = arith.constant 0 : i32
    return %arg0, %c0_i32, %c0_i32_0 : i32, i32, i32
  }
  func.func @transform_8(%arg0: i32) -> (i32, i32, i32) {
    %c0_i32 = arith.constant 0 : i32
    %c0_i32_0 = arith.constant 0 : i32
    %c0_i32_1 = arith.constant 0 : i32
    return %arg0, %c0_i32, %c0_i32_0 : i32, i32, i32
  }
  func.func @transform_9(%arg0: i32) -> (i32, i32, i32) {
    %c0_i32 = arith.constant 0 : i32
    %c0_i32_0 = arith.constant 0 : i32
    %c0_i32_1 = arith.constant 0 : i32
    return %arg0, %c0_i32, %c0_i32_0 : i32, i32, i32
  }
}

</mosaic_0001>

<bundles_post_ra>
// kernel: tpu_custom_call.1
= control target key start
LH: loop header
LB: loop body
LE: loop exit
PB: predicated region body
PF: predicated region fallthrough
CT: control target
= control target key end

     0   :  { %15 = vsyncpa [#allocation3], 0  ;;  %s1508_s0 = inlined_call_operand.hbm [shape: f32[2,32,256], index: 0, kind: input, shape index: {}]   ;;  %s1509_s1 = inlined_call_operand.vmem [shape: f32[4,32], index: 1, kind: input, shape index: {}]   ;;  %s1510_s2 = inlined_call_operand.vmem [shape: f32[4,1], index: 2, kind: input, shape index: {}]   ;;  %s1511_s3 = inlined_call_operand.vmem [shape: f32[4,32], index: 3, kind: input, shape index: {}]   ;;  %s1512_s4 = inlined_call_operand.vmem [shape: f32[4,1], index: 4, kind: input, shape index: {}]   ;;  %s1513_s5 = inlined_call_operand.vmem [shape: f32[32,32], index: 5, kind: input, shape index: {}]   ;;  %s1514_s6 = inlined_call_operand.vmem [shape: f32[32,1], index: 6, kind: input, shape index: {}]   ;;  %s1515_s7 = inlined_call_operand.hbm [shape: bf16[2,4,256], index: 7, kind: output, shape index: {0}]   ;;  %s1516_s8 = inlined_call_operand.hbm [shape: bf16[2,4,256], index: 8, kind: output, shape index: {1}]   ;;  %s1517_s9 = inlined_call_operand.hbm [shape: bf16[2,32,256], index: 9, kind: output, shape index: {2}]  }
   0x1   :  { %17 = vsyncpa [#allocation3 + $0x1], 0 }
   0x2   :  { %18 = vsyncpa [#allocation4], 0 }
   0x3   :  { %20 = vsyncpa [#allocation4 + $0x1], 0 }
   0x4   :  { %21 = vsyncpa [#allocation7], 0 }
   0x5   :  { %23 = vsyncpa [#allocation7 + $0x1], 0  ;;  %s1229_s30 = smov 0   ;;  %s1231_s10 = smov 0  }
   0x6   :  { %s1233_s11 = smov 0   ;;  %s1235_s12 = smov 0  }
   0x7 LB: > { %1524 = sst [smem:[#allocation12_spill]] %s1163_s11  ;;  %s1250_s13 = sadd.s32 4294967295, %s1167_s12   ;;  %s1167_s12 = sphi %s1235_s12, %s1542_s12   ;;  %s1163_s11 = sphi %s1233_s11, %s1539_s11   ;;  %s1159_s10 = sphi %s1231_s10, %s1541_s10   ;;  %s1155_s30 = sphi %s1229_s30, %s1540_s30  }
   0x8   : > { %s1518_s14 = sadd.s32 4294967294, %s1167_s12   ;;  %s1254_s15 = sadd.s32 1, %s1167_s12  }
   0x9   : > { %s36_s16 = sadd.s32 1, %s1163_s11  ;;  %s33_s17 = ssub.s32 %s1167_s12, %s1254_s15 }
   0xa   : > { %p43_p0 = scmp.ne.s32.totalorder %s1163_s11, %s1159_s10  ;;  %p34_p1 = scmp.eq.s32.totalorder %s33_s17, 0 }
   0xb   : > { %p44_p2 = scmp.eq.s32.totalorder %s1167_s12, 0  ;;  %p49_p3 = scmp.ne.s32.totalorder %s1159_s10, %s1155_s30 }
   0xc   : > { %p50_p4 = scmp.eq.s32.totalorder %s1250_s13, 0  ;;  %p199_p7 = scmp.eq.s32.totalorder %s1250_s13, 1 }
   0xd   : > { %s1266_s18 = scalar_select %p34_p1, %s1163_s11, %s36_s16  }
   0xe   : > { %p1268_p5 = por %p44_p2, %p43_p0  ;;  %p1272_p6 = por %p50_p4, %p49_p3 }
   0xf   : > { %1525 = sst [smem:[#allocation13_spill]] %s1266_s18  ;;  %p205_p8 = scmp.eq.s32.totalorder %s1518_s14, 1 }
  0x10   : > { %s1527_s20 = scalar_select %p1272_p6, 1, 0 }
  0x11   : > { %p977_p10 = scmp.lt.s32.totalorder %s1167_s12, 2  ;;  %p1281_p11 = por %p199_p7, %p43_p0 }
  0x12   : > { %p1285_p12 = por %p205_p8, %p49_p3  ;;  %s295_s23 = sand.u32 1, %s1163_s11  }
  0x13   : > { %s1528_s21 = scalar_select %p1281_p11, 1, 0 }
  0x14   : > { %s1529_s22 = scalar_select %p1285_p12, 1, 0 }
  0x15   : > { %s947_s24 = sshll.u32 %s1167_s12, 10  ;;  %s914_s25 = sshll.u32 %s295_s23, 6 }
  0x16   : > { %s1294_s28 = scalar_lea.hbm %s1508_s0, %s947_s24  ;;  %s299_s29 = scalar_lea.vmem [#allocation2], %s914_s25 }
  0x17   : > { %s306_s16 = sshll.u32 %s299_s29, 4  ;;  %p1298_p13 = pnand %p977_p10, %p1268_p5  ;;  %s1302_s16 = int_to_ptr.vmem [resolvable:$true] %s306_s16 }
  0x18   : > { %s1304_s14 = scalar_lea.sflag [#allocation3], %s295_s23  ;;  %s1019_s18 = scalar_lea.hbm %s1294_s28, 1024 }
  0x19   : > { %p1020_p0 = scmp.ne.s32.totalorder %s1294_s28, %s1019_s18  ;;  %p1021_p1 = pneg %p1298_p13 }
  0x1a   : > { %s1024_s25 = scalar_lea.hbm %s1508_s0, 2048  ;;  %p1025_p4 = scmp.lt.s32.totalorder %s1294_s28, %s1508_s0 }
  0x1b   : > { %p1022_p2 = pnand %p1021_p1, %p1020_p0  ;;  %p1026_p5 = scmp.lt.s32.totalorder %s1024_s25, %s1019_s18 }
  0x1d   : > { %p1023_p3 = pneg %p1022_p2  ;;  %p1027_p7 = por %p1026_p5, %p1025_p4 }
  0x1f   : > { %p1028_p8 = pnand %p1027_p7, %p1023_p3 }
  0x21   : > { %1031 = shalt.err (!%p1028_p8)
}
  0x22   : > { %s1032_s23 = scalar_lea.vmem %s1302_s16, 1024  ;;  %s1169_s29 = smov [#allocation2]  }
  0x23   : > { %p1033_p10 = scmp.ne.s32.totalorder %s1302_s16, %s1032_s23  ;;  %s1037_s11 = sshll.u32 %s1169_s29, 4  ;;  %s1038_s11 = int_to_ptr.vmem [resolvable:$false] %s1037_s11 }
  0x24   : > { %s1039_s24 = scalar_lea.vmem %s1038_s11, 2048  ;;  %p1040_p2 = scmp.lt.s32.totalorder %s1302_s16, %s1038_s11 }
  0x25   : > { %p1035_p9 = pnand %p1033_p10, %p1021_p1  ;;  %p1041_p12 = scmp.lt.s32.totalorder %s1039_s24, %s1032_s23 }
  0x27   : > { %p1036_p0 = pneg %p1035_p9  ;;  %p1042_p11 = por %p1041_p12, %p1040_p2 }
  0x29   : > { %p1043_p6 = pnand %p1042_p11, %p1036_p0 }
  0x2b   : > { %1046 = shalt.err (!%p1043_p6)
}
  0x2c   : > { %s1170_s18 = smov 256   ;;  %s1171_s26 = smov 16  }
  0x2d   : > { %966 = dma.hbm_to_vmem [thread:$0]  (!%p1298_p13), %s1294_s28, 1024, %s1302_s16, %s1304_s14, %s1170_s18, %s1170_s18, %s1171_s26  }
  0x2e   : > { %p917_p9 = scmp.ge.s32.totalorder %s1167_s12, 1  ;;  %p314_p1 = scmp.lt.s32.totalorder %s1167_s12, 3 }
  0x30   : > { %p315_p3 = pnand %p917_p9, %p314_p1 }
  0x31   : > { %s1328_s11 = sand.u32 (!%p315_p3), 1, %s1159_s10   ;;  %p1531_p6 = scmp.ne.s32.totalorder (!%p315_p3), %s1527_s20, 0 }
  0x32   : > { %318 = sbr.rel (%p315_p3) target bundleno = 329 (0x149), region = 48  ;;  %s918_s25 = sshll.u32 (!%p315_p3), %s1328_s11, 6 }
  0x33   : > { %s321_s19 = scalar_lea.sflag (!%p315_p3), [#allocation3], %s1328_s11  ;;  %s324_s27 = scalar_lea.vmem (!%p315_p3), [#allocation2], %s918_s25 }
  0x37   : > { %1142 = dma.done.wait (%p1531_p6), %s321_s19, 1024  }
  0x38   : > { %1144 = vsyncadd (%p1531_p6), %s321_s19, 4294966272  ;;  %v1172_v0 = vmov 0.0   ;;  %v1173_v1 = vmov 0   ;;  %v376_v2 = vld [vmem:[%s324_s27 + $0x38] sm:$0xff]  ;;  %v375_v3 = vld [vmem:[%s324_s27 + $0x30] sm:$0xff]  ;;  %vm384_vm0 = vcmask 261120  }
  0x39   : > { %644 = vmatprep.mubr.f32.mxu0 %v1172_v0  ;;  %452 = vmatprep.mubr.f32.mxu1 %v1172_v0  ;;  %v374_v4 = vld [vmem:[%s324_s27 + $0x28] sm:$0xff]  ;;  %v373_v5 = vld [vmem:[%s324_s27 + $0x20] sm:$0xff]  ;;  %v372_v6 = vld [vmem:[%s324_s27 + $0x18] sm:$0xff]  ;;  %s1523_s19 = sshll.u32 %s1328_s11, 2  ;;  %s1522_s14 = sshll.u32 %s1250_s13, 6 }
  0x3a   : > { %1018 = vset.pattern.permute.xlu1 %v1173_v1  ;;  %1017 = vset.pattern.permute.xlu0 %v1173_v1  ;;  %v371_v7 = vld [vmem:[%s324_s27 + $0x10] sm:$0xff]  ;;  %v370_v8 = vld [vmem:[%s324_s27 + $0x8] sm:$0xff]  ;;  %v369_v9 = vld [vmem:[%s324_s27] sm:$0xff]  ;;  %s921_s27 = sshll.u32 %s1328_s11, 5  ;;  %s354_s20 = scalar_lea.vmem [#allocation5], %s1523_s19 }
  0x3b   : > { %412 = vmatprep.subr.mxu1 %v376_v2  ;;  %604 = vmatprep.subr.mxu0 %v376_v2  ;;  %v540_v10 = vld [vmem:[%s1513_s5] sm:$0xff]  ;;  %v541_v13 = vld [vmem:[%s1513_s5 + $0x8] sm:$0xff]  ;;  %v542_v16 = vld [vmem:[%s1513_s5 + $0x10] sm:$0xff]  ;;  %s750_s28 = sshll.u32 %s354_s20, 4  ;;  %s1390_s23 = scalar_lea.hbm %s1515_s7, %s1522_s14  ;;  %s1392_s28 = int_to_ptr.vmem [resolvable:$true] %s750_s28 }
  0x3c   : > { %413 = vmatpush1.msra.mxu1 %v375_v3  ;;  %605 = vmatpush1.msra.mxu0 %v375_v3  ;;  %v377_v11 = vld [vmem:[%s1509_s1] sm:$0xf]  ;;  %v545_v15 = vld [vmem:[%s1514_s6 + $0x8] sm:$0xff]  ;;  %v547_v19 = vld [vmem:[%s1514_s6 + $0x18] sm:$0xff]  ;;  %s1394_s29 = scalar_lea.vmem [#allocation8], %s921_s27  ;;  %s726_s24 = scalar_lea.sflag [#allocation4], %s1328_s11 }
  0x3d   : > { %414 = vmatprep.subr.mxu1 %v374_v4  ;;  %606 = vmatprep.subr.mxu0 %v374_v4  ;;  %v544_v12 = vld [vmem:[%s1514_s6] sm:$0xff]  ;;  %v543_v20 = vld [vmem:[%s1513_s5 + $0x18] sm:$0xff]  ;;  %v546_v21 = vld [vmem:[%s1514_s6 + $0x10] sm:$0xff]  ;;  %s1047_s18 = scalar_lea.vmem %s1392_s28, 64  ;;  %p1532_p12 = scmp.ne.s32.totalorder %s1528_s21, 0 }
  0x3e   : > { %415 = vmatpush1.msra.mxu1 %v373_v5  ;;  %607 = vmatpush1.msra.mxu0 %v373_v5  ;;  %v460_v14 = vld [vmem:[%s1512_s4] sm:$0xf]  ;;  %p1048_p11 = scmp.ne.s32.totalorder %s1392_s28, %s1047_s18  ;;  %s1174_s26 = smov [#allocation5]  }
  0x3f   : > { %416 = vmatprep.subr.mxu1 %v372_v6  ;;  %608 = vmatprep.subr.mxu0 %v372_v6  ;;  %v459_v17 = vld [vmem:[%s1511_s3] sm:$0xf]  ;;  %s1051_s25 = sshll.u32 %s1174_s26, 4  ;;  %s1052_s25 = int_to_ptr.vmem [resolvable:$false] %s1051_s25 }
  0x40   : > { %417 = vmatpush1.msra.mxu1 %v371_v7  ;;  %609 = vmatpush1.msra.mxu0 %v371_v7  ;;  %v378_v18 = vld [vmem:[%s1510_s2] sm:$0xf]  ;;  %p1049_p13 = pnand %p1048_p11, %p1532_p12  ;;  %s1053_s27 = scalar_lea.vmem %s1052_s25, 128 }
  0x41   : > { %418 = vmatprep.subr.mxu1 %v370_v8  ;;  %610 = vmatprep.subr.mxu0 %v370_v8  ;;  %p1054_p5 = scmp.lt.s32.totalorder %s1392_s28, %s1052_s25  ;;  %p1055_p7 = scmp.lt.s32.totalorder %s1053_s27, %s1047_s18 }
  0x42   : > { %419 = vmatpush1.msra.mxu1 %v369_v9  ;;  %611 = vmatpush1.msra.mxu0 %v369_v9  ;;  %p1050_p4 = pneg %p1049_p13 }
  0x43   : > { %493 = vmatprep.subr.mxu1 %v376_v2  ;;  %924 = vmatmul.mubr.msk.f32.vlgmr.msra.gmra.mxu0 %vm384_vm0, %v540_v10  ;;  %p1056_p8 = por %p1055_p7, %p1054_p5 }
  0x44   : > { %922 = vmatmul.mubr.msk.f32.vlgmr.msra.gmra.mxu1 %vm384_vm0, %v377_v11  ;;  %650 = vmatprep.mubr.f32.mxu0 %v1172_v0 }
  0x45   : > { %494 = vmatpush1.msra.mxu1 %v375_v3  ;;  %533 = vmatprep.mubr.f32.mxu1 %v1172_v0  ;;  %p1057_p10 = pnand %p1056_p8, %p1050_p4 }
  0x46   : > { %495 = vmatprep.subr.mxu1 %v374_v4  ;;  %550 = vperm.xlu1 %1018, %v544_v12  }
  0x47   : > { %496 = vmatpush1.msra.mxu1 %v373_v5  ;;  %925 = vmatmul.mubr.msk.f32.gmra.mxu0 %vm384_vm0, %v541_v13 }
  0x48   : > { %497 = vmatprep.subr.mxu1 %v372_v6  ;;  %656 = vmatprep.mubr.f32.mxu0 %v1172_v0 }
  0x49   : > { %498 = vmatpush1.msra.mxu1 %v371_v7  ;;  %463 = vperm.xlu0 %1017, %v460_v14  }
  0x4a   : > { %499 = vmatprep.subr.mxu1 %v370_v8  ;;  %555 = vperm.xlu1 %1018, %v545_v15  }
  0x4b   : > { %500 = vmatpush1.msra.mxu1 %v369_v9  ;;  %926 = vmatmul.mubr.msk.f32.gmra.mxu0 %vm384_vm0, %v542_v16 }
  0x4c   : > { %923 = vmatmul.mubr.msk.f32.vlgmr.msra.gmra.mxu1 %vm384_vm0, %v459_v17  ;;  %662 = vmatprep.mubr.f32.mxu0 %v1172_v0 }
  0x4d   : > { %381 = vperm.xlu0 %1017, %v378_v18  }
  0x4e   : > { %565 = vperm.xlu1 %1018, %v547_v19  }
  0x4f   : > { %927 = vmatmul.mubr.msk.f32.gmra.mxu0 %vm384_vm0, %v543_v20 }
  0x51   : > { %560 = vperm.xlu0 %1017, %v546_v21  }
  0xc1   : > { %v551_v23 = vpop.permute.xlu1 %550 }
  0xc4   : > { %v1378_v22 = vpop.permute.xlu0 %463 }
  0xc5   : > { %v556_v35 = vpop.permute.xlu1 %555 }
  0xc8   : > { %v382_v25 = vpop.permute.xlu0 %381 }
 0x103   : > { %v646_v24 = vpop.f32.mrf.mxu0 }
 0x104   : > { %v454_v26 = vpop.f32.mrf.mxu1  ;;  %v647_v29 = vadd.f32 %v646_v24, %v551_v23 }
 0x105   : > { %v455_v27 = vadd.f32 %v454_v26, %v382_v25  ;;  %v648_v28 = vpop.f32.mrf.mxu0 }
 0x106   : > { %v649_v30 = vadd.f32 %v648_v28, %v551_v23  ;;  %v456_v31 = vpop.f32.mrf.mxu1 }
 0x107   : > { %v457_v32 = vadd.f32 %v456_v31, %v382_v25  ;;  %v652_v33 = vpop.f32.mrf.mxu0 }
 0x108   : > { %v948_v34 = vpack.c.bf16 %v649_v30, %v647_v29  ;;  %v653_v38 = vadd.f32 %v652_v33, %v556_v35 }
 0x109   : > { %v928_v36 = vpack.c.bf16 %v457_v32, %v455_v27  ;;  %v654_v37 = vpop.f32.mrf.mxu0 }
 0x10a   : > { %721 = vst [vmem:[%s1394_s29] sm:$0xff] %v948_v34  ;;  %v655_v39 = vadd.f32 %v654_v37, %v556_v35 }
 0x10b   : > { %v658_v40 = vpop.f32.mrf.mxu0  ;;  %929 = vst.sshfl [vmem:[%s354_s20] sm:$0x33 pattern:$0x76325410] %v928_v36 }
 0x10c   : > { %v949_v41 = vpack.c.bf16 %v655_v39, %v653_v38  ;;  %v535_v42 = vpop.f32.mrf.mxu1 }
 0x10d   : > { %1060 = shalt.err (!%p1057_p10)
}
 0x10e   : > { %s1061_s20 = scalar_lea.hbm %s1390_s23, 64  ;;  %s1065_s26 = scalar_lea.hbm %s1515_s7, 128 }
 0x10f   : > { %p1062_p0 = scmp.ne.s32.totalorder %s1390_s23, %s1061_s20  ;;  %p1066_p1 = scmp.lt.s32.totalorder %s1390_s23, %s1515_s7 }
 0x110   : > { %p1067_p3 = scmp.lt.s32.totalorder %s1065_s26, %s1061_s20 }
 0x111   : > { %p1063_p2 = pnand %p1062_p0, %p1532_p12 }
 0x112   : > { %p1068_p6 = por %p1067_p3, %p1066_p1 }
 0x113   : > { %p1064_p9 = pneg %p1063_p2 }
 0x115   : > { %p1069_p11 = pnand %p1068_p6, %p1064_p9 }
 0x117   : > { %1072 = shalt.err (!%p1069_p11)
}
 0x118   : > { %957 = dma.vmem_to_hbm [thread:$0]  (%p1532_p12), %s1392_s28, 64, %s1390_s23, %s726_s24   ;;  %v561_v43 = vpop.permute.xlu0 %560  ;;  %v660_v44 = vpop.f32.mrf.mxu0  ;;  %722 = vst [vmem:[%s1394_s29 + $0x8] sm:$0xff] %v949_v41  ;;  %v536_v48 = vadd.f32 %v535_v42, %v1378_v22 }
 0x119   : > { %s730_s18 = sand.u32 1, %s1250_s13   ;;  %v659_v45 = vadd.f32 %v658_v40, %v561_v43  ;;  %v537_v46 = vpop.f32.mrf.mxu1  ;;  %v661_v47 = vadd.f32 %v660_v44, %v561_v43  ;;  %s1533_s19 = sshll.u32 %s1328_s11, 2  ;;  %v566_v52 = vpop.permute.xlu1 %565 }
 0x11a   : > { %s361_s14 = scalar_lea.vmem [#allocation6], %s1533_s19  ;;  %s777_s27 = sshll.u32 %s1394_s29, 4  ;;  %v538_v49 = vadd.f32 %v537_v46, %v1378_v22  ;;  %v664_v50 = vpop.f32.mrf.mxu0  ;;  %s1435_s27 = int_to_ptr.vmem [resolvable:$true] %s777_s27 }
 0x11b   : > { %s764_s25 = sshll.u32 %s361_s14, 4  ;;  %s954_s20 = sshll.u32 %s1250_s13, 9  ;;  %v950_v51 = vpack.c.bf16 %v661_v47, %v659_v45  ;;  %v665_v55 = vadd.f32 %v664_v50, %v566_v52  ;;  %s1433_s25 = int_to_ptr.vmem [resolvable:$true] %s764_s25 }
 0x11c   : > { %v930_v53 = vpack.c.bf16 %v538_v49, %v536_v48  ;;  %v666_v54 = vpop.f32.mrf.mxu0  ;;  %s1534_s28 = sshll.u32 %s1250_s13, 6  ;;  %s1441_s26 = scalar_lea.hbm %s1517_s9, %s954_s20 }
 0x11d   : > { %s1431_s16 = scalar_lea.hbm %s1516_s8, %s1534_s28  ;;  %723 = vst [vmem:[%s1394_s29 + $0x10] sm:$0xff] %v950_v51  ;;  %v667_v56 = vadd.f32 %v666_v54, %v566_v52  ;;  %s1443_s13 = scalar_lea.sflag [#allocation7], %s730_s18 }
 0x11e   : > { %931 = vst.sshfl [vmem:[%s361_s14] sm:$0x33 pattern:$0x76325410] %v930_v53  ;;  %s1073_s19 = scalar_lea.vmem %s1433_s25, 64  ;;  %s1175_s28 = smov [#allocation6]  }
 0x11f   : > { %v951_v57 = vpack.c.bf16 %v667_v56, %v665_v55  ;;  %p1074_p13 = scmp.ne.s32.totalorder %s1433_s25, %s1073_s19  ;;  %s1077_s23 = sshll.u32 %s1175_s28, 4  ;;  %s1078_s23 = int_to_ptr.vmem [resolvable:$false] %s1077_s23 }
 0x120   : > { %s1079_s24 = scalar_lea.vmem %s1078_s23, 128  ;;  %p1080_p7 = scmp.lt.s32.totalorder %s1433_s25, %s1078_s23 }
 0x121   : > { %p1075_p4 = pnand %p1074_p13, %p1532_p12  ;;  %p1081_p8 = scmp.lt.s32.totalorder %s1079_s24, %s1073_s19 }
 0x123   : > { %p1076_p5 = pneg %p1075_p4  ;;  %p1082_p10 = por %p1081_p8, %p1080_p7 }
 0x125   : > { %p1083_p0 = pnand %p1082_p10, %p1076_p5 }
 0x127   : > { %1086 = shalt.err (!%p1083_p0)
}
 0x128   : > { %s1087_s18 = scalar_lea.hbm %s1431_s16, 64  ;;  %s1091_s11 = scalar_lea.hbm %s1516_s8, 128 }
 0x129   : > { %p1088_p2 = scmp.ne.s32.totalorder %s1431_s16, %s1087_s18  ;;  %p1092_p3 = scmp.lt.s32.totalorder %s1431_s16, %s1516_s8 }
 0x12a   : > { %p1093_p6 = scmp.lt.s32.totalorder %s1091_s11, %s1087_s18 }
 0x12b   : > { %p1089_p9 = pnand %p1088_p2, %p1532_p12 }
 0x12c   : > { %p1094_p11 = por %p1093_p6, %p1092_p3 }
 0x12d   : > { %p1090_p1 = pneg %p1089_p9 }
 0x12f   : > { %p1095_p13 = pnand %p1094_p11, %p1090_p1 }
 0x131   : > { %1098 = shalt.err (!%p1095_p13)
}
 0x132   : > { %958 = dma.vmem_to_hbm [thread:$0]  (%p1532_p12), %s1433_s25, 64, %s1431_s16, %s1443_s13   ;;  %724 = vst [vmem:[%s1394_s29 + $0x18] sm:$0xff] %v951_v57 }
 0x133   : > { %s1099_s19 = scalar_lea.vmem %s1435_s27, 512  ;;  %s1176_s23 = smov [#allocation8]  }
 0x134   : > { %p1100_p4 = scmp.ne.s32.totalorder %s1435_s27, %s1099_s19  ;;  %s1103_s24 = sshll.u32 %s1176_s23, 4  ;;  %s1104_s24 = int_to_ptr.vmem [resolvable:$false] %s1103_s24 }
 0x135   : > { %s1105_s18 = scalar_lea.vmem %s1104_s24, 1024  ;;  %p1106_p8 = scmp.lt.s32.totalorder %s1435_s27, %s1104_s24 }
 0x136   : > { %p1101_p5 = pnand %p1100_p4, %p1532_p12  ;;  %p1107_p10 = scmp.lt.s32.totalorder %s1105_s18, %s1099_s19 }
 0x138   : > { %p1102_p7 = pneg %p1101_p5  ;;  %p1108_p0 = por %p1107_p10, %p1106_p8 }
 0x13a   : > { %p1109_p2 = pnand %p1108_p0, %p1102_p7 }
 0x13c   : > { %1112 = shalt.err (!%p1109_p2)
}
 0x13d   : > { %s1113_s25 = scalar_lea.hbm %s1441_s26, 512  ;;  %s1117_s14 = scalar_lea.hbm %s1517_s9, 1024 }
 0x13e   : > { %p1114_p9 = scmp.ne.s32.totalorder %s1441_s26, %s1113_s25  ;;  %p1118_p6 = scmp.lt.s32.totalorder %s1441_s26, %s1517_s9 }
 0x13f   : > { %p1119_p11 = scmp.lt.s32.totalorder %s1117_s14, %s1113_s25 }
 0x140   : > { %p1115_p1 = pnand %p1114_p9, %p1532_p12 }
 0x141   : > { %p1120_p13 = por %p1119_p11, %p1118_p6 }
 0x142   : > { %p1116_p3 = pneg %p1115_p1 }
 0x144   : > { %p1121_p4 = pnand %p1120_p13, %p1116_p3 }
 0x146   : > { %1124 = shalt.err (!%p1121_p4)
}
 0x147   : > { %s1177_s17 = smov 128   ;;  %s1178_s28 = smov 8  }
 0x148   : > { %959 = dma.vmem_to_hbm [thread:$0]  (%p1532_p12), %s1435_s27, 512, %s1441_s26, %s1443_s13, %s1177_s17, %s1177_s17, %s1178_s28  }
 0x149 PF: > { %s792_s19 = sand.u32 1, %s1155_s30   ;;  %p1535_p5 = scmp.ne.s32.totalorder %s1529_s22, 0 }
 0x14a   : > { %p1536_p7 = scmp.ge.s32.totalorder %s1167_s12, 2  ;;  %s793_s23 = scalar_lea.sflag [#allocation4], %s792_s19 }
 0x14c   : > { %p968_p8 = pnand %p1536_p7, %p1535_p5 }
 0x14e   : > { %p969_p10 = pneg %p968_p8 }
 0x150   : > { %1146 = dma.done.wait (%p969_p10), %s793_s23, 64  }
 0x151   : > { %1148 = vsyncadd (%p969_p10), %s793_s23, 4294967232  ;;  %s1537_s24 = sadd.s32 4294967294, %s1167_s12  }
 0x152   : > { %s801_s18 = sand.u32 1, %s1537_s24  }
 0x153   : > { %s802_s25 = scalar_lea.sflag [#allocation7], %s801_s18 }
 0x154   : > { %1150 = dma.done.wait (%p969_p10), %s802_s25, 576  }
 0x155   : > { %1152 = vsyncadd (%p969_p10), %s802_s25, 4294966720  ;;  %s1538_s21 = sld [smem:[#allocation12_spill]]  ;;  %p26_p12 = scmp.ge.s32.totalorder %s1254_s15, 4  }
 0x156   : > { %s1539_s11 = sld [smem:[#allocation13_spill]]  ;;  %s1540_s30 = smov %s1159_s10 }
 0x157   : > { %s1542_s12 = smov %s1254_s15  ;;  %28 = sbr.rel (!%p26_p12) target bundleno = 7 (0x7), region = 125 }
 0x15b   : > { %s1541_s10 = smov %s1538_s21 }
 0x15c   :  { %816 = vsyncpa [#allocation3], 1 }
 0x15d   :  { %818 = vsyncpa [#allocation3 + $0x1], 1 }
 0x15e   :  { %819 = vsyncpa [#allocation4], 1 }
 0x15f   :  { %821 = vsyncpa [#allocation4 + $0x1], 1 }
 0x160   :  { %822 = vsyncpa [#allocation7], 1 }
 0x161   :  { %824 = vsyncpa [#allocation7 + $0x1], 1 }

</bundles_post_ra>
